<compile_context>
chip_gen: v5e
topology: v5e:2x2
jax: 0.10.0
libtpu: 0.0.40
codegen_flags: <defaults>
</compile_context>

<pallas_src>
import math

import jax
import jax.numpy as jnp
from jax.experimental import pallas as pl
from jax.experimental.pallas import tpu as pltpu

_LANES = 512           # lane-dense last dim (multiple of 128)
_SUBLANES = 8          # sublane granularity
_MAX_TILE_ROWS = 1024  # (1024, 512) f32 tile = 2 MiB


def expgamma_forward_pallas(x, shape=0.001, rate=0.001):
    """Equivalent of ExpGammaDistribution(shape, rate).forward(x)."""
    orig_shape = x.shape
    orig_dtype = x.dtype

    # Static scalar constants (non-learnable parameter path of the module).
    shape_f = float(shape)
    rate_f = float(rate)
    const_term = shape_f * math.log(rate_f) - math.lgamma(shape_f)

    def kernel(x_ref, o_ref):
        xv = x_ref[...].astype(jnp.float32)
        # forward(x) = const + shape*x - rate*exp(x)   (gamma log-pdf at x, plus x)
        y = const_term + shape_f * xv - rate_f * jnp.exp(xv)
        o_ref[...] = y.astype(o_ref.dtype)

    # Flatten and pad to a lane-dense slab: padded_total % (8*512) == 0.
    total = x.size
    pad_unit = _SUBLANES * _LANES
    padded_total = pl.cdiv(total, pad_unit) * pad_unit
    x_flat = x.reshape(-1)
    if padded_total != total:
        x_flat = jnp.pad(x_flat, (0, padded_total - total))

    rows = padded_total // _LANES          # multiple of 8
    tile_rows = min(rows, _MAX_TILE_ROWS)  # both are multiples of 8
    grid = (pl.cdiv(rows, tile_rows),)

    x2d = x_flat.reshape(rows, _LANES)

    out2d = pl.pallas_call(
        kernel,
        out_shape=jax.ShapeDtypeStruct((rows, _LANES), orig_dtype),
        grid=grid,
        in_specs=[pl.BlockSpec((tile_rows, _LANES), lambda i: (i, 0))],
        out_specs=pl.BlockSpec((tile_rows, _LANES), lambda i: (i, 0)),
        compiler_params=pltpu.CompilerParams(
            dimension_semantics=("parallel",),
        ),
    )(x2d)

    out_flat = out2d.reshape(-1)
    if padded_total != total:
        out_flat = out_flat[:total]
    return out_flat.reshape(orig_shape)


def expgamma_forward_ref(x, shape, rate):
    # Pure-JAX reference of the PyTorch formula: gamma_log_pdf(log_x) + log_x.
    shape = jnp.float32(shape)
    rate = jnp.float32(rate)
    xf = x.astype(jnp.float32)
    gamma_logpdf = (shape * jnp.log(rate)
                    + (shape - 1.0) * xf
                    - rate * jnp.exp(xf)
                    - jax.lax.lgamma(shape))
    return (gamma_logpdf + xf).astype(x.dtype)


# TODO(synk): expectation() (digamma(shape) - log(rate)) is a host-side scalar; not kernelized.

if __name__ == "__main__":
    key = jax.random.PRNGKey(0)
    # x = log_z input, NCHW, small shape
    x = jax.random.normal(key, (2, 4, 16, 16), dtype=jnp.float32)

    out = expgamma_forward_pallas(x, shape=0.001, rate=0.001)
    out = jax.block_until_ready(out)

    ref = expgamma_forward_ref(x, 0.001, 0.001)
    assert out.shape == x.shape and out.dtype == x.dtype
    assert jnp.allclose(out, ref, rtol=1e-5, atol=1e-5), "mismatch vs reference"

    print("KERNEL_OK")
</pallas_src>

<mosaic_0001>
module attributes {stable_mosaic.version = 11 : i64} {
  func.func @kernel(%arg0: i32, %arg1: memref<8x512xf32, #tpu.memory_space<vmem>>, %arg2: memref<8x512xf32, #tpu.memory_space<vmem>>) attributes {dimension_semantics = [#tpu.dimension_semantics<parallel>], iteration_bounds = array<i64: 1>, scalar_prefetch = 0 : i64, scratch_operands = 0 : i64, tpu.core_type = #tpu.core_type<tc>, window_params = [{transform_indices = @transform_0, window_bounds = array<i64: 8, 512>}, {transform_indices = @transform_1, window_bounds = array<i64: 8, 512>}]} {
    %c0 = arith.constant 0 : index
    %c0_0 = arith.constant 0 : index
    %0 = vector.load %arg1[%c0, %c0_0] : memref<8x512xf32, #tpu.memory_space<vmem>>, vector<8x512xf32>
    %cst = arith.constant 1.000000e-03 : f32
    %1 = vector.broadcast %cst : f32 to vector<8x512xf32>
    %2 = arith.mulf %1, %0 : vector<8x512xf32>
    %cst_1 = arith.constant -6.91408682 : f32
    %3 = vector.broadcast %cst_1 : f32 to vector<8x512xf32>
    %4 = arith.addf %3, %2 : vector<8x512xf32>
    %5 = math.exp %0 : vector<8x512xf32>
    %cst_2 = arith.constant 1.000000e-03 : f32
    %6 = vector.broadcast %cst_2 : f32 to vector<8x512xf32>
    %7 = arith.mulf %6, %5 : vector<8x512xf32>
    %8 = arith.subf %4, %7 : vector<8x512xf32>
    %c0_3 = arith.constant 0 : index
    %c0_4 = arith.constant 0 : index
    %9 = vector.load %arg2[%c0_3, %c0_4] : memref<8x512xf32, #tpu.memory_space<vmem>>, vector<8x512xf32>
    tpu.vector_store %arg2[%c0_3, %c0_4], %8 {strides = array<i32>} : memref<8x512xf32, #tpu.memory_space<vmem>>, vector<8x512xf32>,
    return
  }
  func.func @transform_0(%arg0: i32) -> (i32, i32) {
    %c0_i32 = arith.constant 0 : i32
    %c0_i32_0 = arith.constant 0 : i32
    return %arg0, %c0_i32 : i32, i32
  }
  func.func @transform_1(%arg0: i32) -> (i32, i32) {
    %c0_i32 = arith.constant 0 : i32
    %c0_i32_0 = arith.constant 0 : i32
    return %arg0, %c0_i32 : i32, i32
  }
}

</mosaic_0001>

<bundles_post_ra>
// kernel: tpu_custom_call.1
= control target key start
LH: loop header
LB: loop body
LE: loop exit
PB: predicated region body
PF: predicated region fallthrough
CT: control target
= control target key end

     0   :  { %6 = vsyncpa [#allocation3], 0  ;;  %s152_s0 = inlined_call_operand.hbm [shape: f32[8,512], index: 0, kind: input, shape index: {}]   ;;  %s153_s1 = inlined_call_operand.hbm [shape: f32[8,512], index: 1, kind: output, shape index: {}]  }
   0x1   :  { %7 = vsyncpa [#allocation4], 0  ;;  %s13_s8 = sshll.u32 %s152_s0, 4  ;;  %s134_s9 = smov [#allocation2]   ;;  %s14_s8 = int_to_ptr.hbm [resolvable:$true] %s13_s8 }
   0x2   :  { %s15_s10 = sshll.u32 %s134_s9, 4  ;;  %s16_s10 = int_to_ptr.vmem [resolvable:$true] %s15_s10 }
   0x3   :  { %18 = dma.hbm_to_vmem [thread:$0]  %s14_s8, 512, %s16_s10, [#allocation3]  }
   0x4   :  { %130 = dma.done.wait [#allocation3], 512  }
   0x5   :  { %131 = vsyncadd [#allocation3], 4294966784  ;;  %v23_v0 = vld [vmem:[#allocation2] sm:$0xff]  ;;  %v24_v1 = vld [vmem:[#allocation2 + $0x8] sm:$0xff]  ;;  %s135_s0 = smov [#allocation5]   ;;  %s62_s14 = sshll.u32 %s153_s1, 4  ;;  %s63_s14 = int_to_ptr.hbm [resolvable:$true] %s62_s14 }
   0x6   :  { %v25_v2 = vld [vmem:[#allocation2 + $0x10] sm:$0xff]  ;;  %v35_v3 = vmul.f32 1.442695, %v23_v0  ;;  %v37_v4 = vmul.f32 1.442695, %v24_v1  ;;  %v26_v6 = vld [vmem:[#allocation2 + $0x18] sm:$0xff] }
   0x7   :  { %v39_v5 = vmul.f32 1.442695, %v25_v2  ;;  %v27_v7 = vmul.f32 0.001, %v23_v0  ;;  %v41_v8 = vmul.f32 1.442695, %v26_v6 }
   0x8   :  { %74 = vpow2.f32 %v35_v3  ;;  %v28_v9 = vmul.f32 0.001, %v24_v1  ;;  %v29_v10 = vmul.f32 0.001, %v25_v2  ;;  %v30_v11 = vmul.f32 0.001, %v26_v6 }
   0x9   :  { %76 = vpow2.f32 %v37_v4  ;;  %v31_v12 = vadd.f32 -6.914087, %v27_v7  ;;  %s60_s11 = sshll.u32 %s135_s0, 4  ;;  %s61_s11 = int_to_ptr.vmem [resolvable:$true] %s60_s11 }
   0xa   :  { %78 = vpow2.f32 %v39_v5  ;;  %v32_v14 = vadd.f32 -6.914087, %v28_v9  ;;  %v33_v17 = vadd.f32 -6.914087, %v29_v10  ;;  %v34_v20 = vadd.f32 -6.914087, %v30_v11 }
   0xb   :  { %80 = vpow2.f32 %v41_v8 }
   0xe   :  { %v75_v13 = vpop.eup %74 }
   0xf   :  { %v77_v15 = vpop.eup %76  ;;  %v43_v16 = vmul.f32 0.001, %v75_v13 }
  0x10   :  { %v79_v18 = vpop.eup %78  ;;  %v44_v19 = vmul.f32 0.001, %v77_v15 }
  0x11   :  { %v81_v21 = vpop.eup %80  ;;  %v47_v22 = vsub.f32 %v31_v12, %v43_v16  ;;  %v45_v23 = vmul.f32 0.001, %v79_v18 }
  0x12   :  { %v48_v24 = vsub.f32 %v32_v14, %v44_v19  ;;  %v46_v25 = vmul.f32 0.001, %v81_v21 }
  0x13   :  { %51 = vst [vmem:[#allocation5] sm:$0xff] %v47_v22  ;;  %v49_v26 = vsub.f32 %v33_v17, %v45_v23 }
  0x14   :  { %52 = vst [vmem:[#allocation5 + $0x8] sm:$0xff] %v48_v24  ;;  %v50_v27 = vsub.f32 %v34_v20, %v46_v25 }
  0x15   :  { %53 = vst [vmem:[#allocation5 + $0x10] sm:$0xff] %v49_v26 }
  0x16   :  { %54 = vst [vmem:[#allocation5 + $0x18] sm:$0xff] %v50_v27 }
  0x17   :  { %65 = dma.vmem_to_hbm [thread:$0]  %s61_s11, 512, %s63_s14, [#allocation4]  }
  0x18   :  { %132 = dma.done.wait [#allocation4], 512  }
  0x19   :  { %133 = vsyncadd [#allocation4], 4294966784 }
  0x1a   :  { %70 = vsyncpa [#allocation3], 1 }
  0x1b   :  { %71 = vsyncpa [#allocation4], 1 }

</bundles_post_ra>
